<compile_context>
chip_gen: v7x
topology: tpu7x:2x2x1
jax: 0.10.0
libtpu: 0.0.40
codegen_flags: <defaults>
</compile_context>

<pallas_src>
import jax
import jax.numpy as jnp
from jax.experimental import pallas as pl
from jax.experimental.pallas import tpu as pltpu


def _cnn_kernel(x_ref, w_ref, out_ref):
    # x_ref   : (2*C_pad, Win_h) bf16  even/odd-deinterleaved channel-major
    #           input; row C_pad-1 is an all-ones bias channel.
    # w_ref   : (2*F_pad, 4*C_pad) bf16 folded weights; rows [0,F_pad) produce
    #           conv[2j], rows [F_pad,2*F_pad) produce conv[2j+1]; the four
    #           C_pad column blocks match input positions 2j,2j+1,2j+2,2j+3.
    # out_ref : (F_pad, Wh) f32  relu(max(conv[2j], conv[2j+1])) -- the pooled
    #           output, lane-compact (one lane per pooled position).
    f_pad, wh = out_ref.shape
    x_all = x_ref[...]                                     # single aligned load
    # Columns j and j+1 together hold the 4 taps of pooled output j.
    stack = jnp.concatenate([x_all[:, 0:wh], x_all[:, 1:wh + 1]], axis=0)
    y = jnp.dot(w_ref[...], stack, preferred_element_type=jnp.float32)
    # MaxPool(2) = aligned sublane max of the two parity blocks; ReLU and the
    # (uniform-per-position) bias commute with the max.
    out_ref[...] = jnp.maximum(jnp.maximum(y[:f_pad, :], y[f_pad:, :]), 0.0)


def cnn_forward(x, w, b):
    """x: (N, C, L) float, w: (F, C, 3), b: (F,).  Returns (N, F*(L//2))."""
    x = x.astype(jnp.float32)
    w = w.astype(jnp.float32)
    b = b.astype(jnp.float32)
    N, C, L = x.shape
    F, _, K = w.shape
    assert K == 3
    assert L % 2 == 0, "MaxPool1d(2): odd L would drop the trailing position"
    Lh = L // 2
    seg = L + 2                        # per-batch padded segment length (even)
    segh = seg // 2                    # pooled lanes per batch segment
    Mh = N * segh                      # batch folded into the lane axis (pooled)

    C_pad = ((C + 1 + 7) // 8) * 8     # channels + bias channel, sublane-aligned
    F_pad = ((F + 7) // 8) * 8
    Wh = ((Mh + 127) // 128) * 128     # lane-dense pooled output width
    Win_h = Wh + 128                   # slack so the +1-lane shifted slice is in-bounds

    in_dtype = jnp.bfloat16            # halve the dominant HBM input stream

    # ---- layout plumbing (XLA, single pass): pad, channel-major, even/odd split
    x_pad = jnp.pad(x, ((0, 0), (0, 0), (1, 1)))                     # (N, C, seg)
    x_eo = jnp.transpose(x_pad, (1, 0, 2)).reshape(C, Mh, 2)          # (C, Mh, 2)
    X2 = jnp.zeros((2 * C_pad, Win_h), jnp.float32)
    X2 = X2.at[:C, :Mh].set(x_eo[:, :, 0])                            # even positions
    X2 = X2.at[C_pad:C_pad + C, :Mh].set(x_eo[:, :, 1])               # odd positions
    X2 = X2.at[C_pad - 1, :].set(1.0)                                 # bias channel
    X2 = X2.astype(in_dtype)

    # ---- folded weights (2*F_pad, 4*C_pad); bias rides the ones channel ----
    W4 = jnp.zeros((2 * F_pad, 4 * C_pad), jnp.float32)
    for k in range(K):
        # conv[2j]   uses positions 2j, 2j+1, 2j+2   -> column blocks 0, 1, 2
        W4 = W4.at[:F, k * C_pad:k * C_pad + C].set(w[:, :, k])
        # conv[2j+1] uses positions 2j+1, 2j+2, 2j+3 -> column blocks 1, 2, 3
        W4 = W4.at[F_pad:F_pad + F,
                   (k + 1) * C_pad:(k + 1) * C_pad + C].set(w[:, :, k])
    W4 = W4.at[:F, C_pad - 1].set(b)                   # bias, even-parity rows
    W4 = W4.at[F_pad:F_pad + F, C_pad - 1].set(b)      # bias, odd-parity rows
    W4 = W4.astype(in_dtype)

    in_bytes = 2 * C_pad * Win_h * 2 + 2 * F_pad * 4 * C_pad * 2
    out_bytes = F_pad * Wh * 4
    cost = pl.CostEstimate(flops=2 * (2 * F_pad) * (4 * C_pad) * Wh,
                           transcendentals=0,
                           bytes_accessed=in_bytes + out_bytes)

    out_full = pl.pallas_call(
        _cnn_kernel,
        out_shape=jax.ShapeDtypeStruct((F_pad, Wh), jnp.float32),
        grid=(1,),
        in_specs=[
            pl.BlockSpec((2 * C_pad, Win_h), lambda i: (0, 0)),
            pl.BlockSpec((2 * F_pad, 4 * C_pad), lambda i: (0, 0)),
        ],
        out_specs=pl.BlockSpec((F_pad, Wh), lambda i: (0, 0)),
        compiler_params=pltpu.CompilerParams(
            dimension_semantics=("arbitrary",)),
        cost_estimate=cost,
    )(X2, W4)

    # ---- keep the L//2 valid pooled positions of each batch segment ----
    y = out_full[:F, :Mh].reshape(F, N, segh)[:, :, :Lh]              # (F, N, Lh)
    return jnp.transpose(y, (1, 0, 2)).reshape(N, F * Lh)             # Flatten


def cnn_reference(x, w, b):
    """Pure-JAX reference matching the PyTorch module semantics."""
    x = x.astype(jnp.float32)
    N, C, L = x.shape
    F = w.shape[0]
    K = w.shape[2]
    Lh = L // 2
    x_pad = jnp.pad(x, ((0, 0), (0, 0), (1, 1)))
    shifts = jnp.stack([x_pad[:, :, k: k + L] for k in range(K)], axis=0)
    conv = jnp.einsum('kncl,fck->nfl', shifts, w) + b[None, :, None]
    conv = jnp.maximum(conv, 0.0)
    pooled = conv.reshape(N, F, Lh, 2).max(axis=-1)
    return pooled.reshape(N, F * Lh)


if __name__ == "__main__":
    key = jax.random.PRNGKey(0)
    k_x, k_w, k_b = jax.random.split(key, 3)

    # Module hyperparameters: input_size (=C_in) channels, 5 filters, kernel 3.
    N, C, L = 2, 4, 16
    F, K = 5, 3

    x = jax.random.normal(k_x, (N, C, L), dtype=jnp.float32)

    # Deterministic parameter init (PyTorch-style uniform bound 1/sqrt(C*K)).
    bound = 1.0 / (C * K) ** 0.5
    w = jax.random.uniform(k_w, (F, C, K), minval=-bound, maxval=bound,
                           dtype=jnp.float32)
    b = jax.random.uniform(k_b, (F,), minval=-bound, maxval=bound,
                           dtype=jnp.float32)

    out = jax.block_until_ready(cnn_forward(x, w, b))
    ref = cnn_reference(x, w, b)

    assert out.shape == (N, F * (L // 2)), out.shape
    # bf16 kernel inputs with f32 accumulation -> relaxed tolerance.
    assert jnp.allclose(out, ref, atol=5e-2, rtol=5e-2), \
        float(jnp.max(jnp.abs(out - ref)))
    print("KERNEL_OK")
</pallas_src>

<mosaic_0001>
module attributes {stable_mosaic.version = 11 : i64} {
  func.func @_cnn_kernel(%arg0: i32, %arg1: memref<16x256xbf16, #tpu.memory_space<vmem>>, %arg2: memref<16x32xbf16, #tpu.memory_space<vmem>>, %arg3: memref<8x128xf32, #tpu.memory_space<vmem>>) attributes {dimension_semantics = [#tpu.dimension_semantics<arbitrary>], iteration_bounds = array<i64: 1>, scalar_prefetch = 0 : i64, scratch_operands = 0 : i64, tpu.core_type = #tpu.core_type<tc>, window_params = [{pipeline_mode = #tpu.pipeline_mode<synchronous>, transform_indices = @transform_0, window_bounds = array<i64: 16, 256>}, {pipeline_mode = #tpu.pipeline_mode<synchronous>, transform_indices = @transform_1, window_bounds = array<i64: 16, 32>}, {pipeline_mode = #tpu.pipeline_mode<synchronous>, transform_indices = @transform_2, window_bounds = array<i64: 8, 128>}]} {
    %c0 = arith.constant 0 : index
    %c0_0 = arith.constant 0 : index
    %0 = vector.load %arg1[%c0, %c0_0] : memref<16x256xbf16, #tpu.memory_space<vmem>>, vector<16x256xbf16>
    %1 = vector.extract_strided_slice %0 {offsets = [0, 0], sizes = [16, 128], strides = [1, 1]} : vector<16x256xbf16> to vector<16x128xbf16>
    %2 = vector.extract_strided_slice %0 {offsets = [0, 1], sizes = [16, 128], strides = [1, 1]} : vector<16x256xbf16> to vector<16x128xbf16>
    %3 = tpu.concatenate %1, %2 in 0 : vector<16x128xbf16>, vector<16x128xbf16> -> vector<32x128xbf16>
    %c0_1 = arith.constant 0 : index
    %c0_2 = arith.constant 0 : index
    %4 = vector.load %arg2[%c0_1, %c0_2] : memref<16x32xbf16, #tpu.memory_space<vmem>>, vector<16x32xbf16>
    %cst = arith.constant dense<0.000000e+00> : vector<16x128xf32>
    %5 = tpu.matmul %4, %3, %cst {dimension_numbers = #tpu.dot_dimension_numbers<[1], [0], [0], [1], [0, 0, 1, 1], [], []>} : vector<16x32xbf16>, vector<32x128xbf16>, vector<16x128xf32> -> vector<16x128xf32>
    %6 = vector.extract_strided_slice %5 {offsets = [0, 0], sizes = [8, 128], strides = [1, 1]} : vector<16x128xf32> to vector<8x128xf32>
    %7 = vector.extract_strided_slice %5 {offsets = [8, 0], sizes = [8, 128], strides = [1, 1]} : vector<16x128xf32> to vector<8x128xf32>
    %8 = arith.maximumf %6, %7 : vector<8x128xf32>
    %cst_3 = arith.constant 0.000000e+00 : f32
    %9 = vector.broadcast %cst_3 : f32 to vector<8x128xf32>
    %10 = arith.maximumf %8, %9 : vector<8x128xf32>
    %c0_4 = arith.constant 0 : index
    %c0_5 = arith.constant 0 : index
    %11 = vector.load %arg3[%c0_4, %c0_5] : memref<8x128xf32, #tpu.memory_space<vmem>>, vector<8x128xf32>
    tpu.vector_store %arg3[%c0_4, %c0_5], %10 {strides = array<i32>} : memref<8x128xf32, #tpu.memory_space<vmem>>, vector<8x128xf32>,
    return
  }
  func.func @transform_0(%arg0: i32) -> (i32, i32) {
    %c0_i32 = arith.constant 0 : i32
    %c0_i32_0 = arith.constant 0 : i32
    %c0_i32_1 = arith.constant 0 : i32
    return %c0_i32, %c0_i32_0 : i32, i32
  }
  func.func @transform_1(%arg0: i32) -> (i32, i32) {
    %c0_i32 = arith.constant 0 : i32
    %c0_i32_0 = arith.constant 0 : i32
    %c0_i32_1 = arith.constant 0 : i32
    return %c0_i32, %c0_i32_0 : i32, i32
  }
  func.func @transform_2(%arg0: i32) -> (i32, i32) {
    %c0_i32 = arith.constant 0 : i32
    %c0_i32_0 = arith.constant 0 : i32
    %c0_i32_1 = arith.constant 0 : i32
    return %c0_i32, %c0_i32_0 : i32, i32
  }
}

</mosaic_0001>

<bundles_post_ra>
// kernel: tpu_custom_call.1
= control target key start
LH: loop header
LB: loop body
LE: loop exit
PB: predicated region body
PF: predicated region fallthrough
CT: control target
= control target key end

     0   :  { %7 = vsyncpa [#allocation3], 0  ;;  %s292_s0 = inlined_call_operand.hbm [shape: bf16[16,256], index: 0, kind: input, shape index: {}]   ;;  %s293_s1 = inlined_call_operand.hbm [shape: bf16[16,32], index: 1, kind: input, shape index: {}]   ;;  %s294_s2 = inlined_call_operand.hbm [shape: f32[8,128], index: 2, kind: output, shape index: {}]  }
   0x1   :  { %8 = vsyncpa [#allocation6], 0 }
   0x2   :  { %9 = vsyncpa [#allocation4], 0  ;;  %s231_s9 = smov [#allocation2]   ;;  %s159_s13 = scalar_lea.hbm %s292_s0, 256 }
   0x3   :  { %s15_s10 = sshll.u32 %s231_s9, 4  ;;  %p160_p0 = scmp.ne.s32.totalorder %s292_s0, %s159_s13  ;;  %s16_s10 = int_to_ptr.vmem [resolvable:$true] %s15_s10 }
   0x4   :  { %p163_p1 = scmp.lt.u32.totalorder %s159_s13, %s292_s0 }
   0x6   :  { %p165_p2 = pnand %p163_p1, %p160_p0 }
   0x8   :  { %168 = shalt.err (!%p165_p2)
}
   0x9   :  { %s169_s18 = scalar_lea.vmem %s16_s10, 256  ;;  %p174_p4 = scmp.lt.s32.totalorder %s16_s10, %s16_s10 }
   0xa   :  { %p170_p3 = scmp.ne.s32.totalorder %s16_s10, %s169_s18  ;;  %p175_p5 = scmp.lt.s32.totalorder %s169_s18, %s169_s18 }
   0xc   :  { %p176_p6 = por %p175_p5, %p174_p4 }
   0xe   :  { %p177_p7 = pnand %p176_p6, %p170_p3 }
  0x10   :  { %180 = shalt.err (!%p177_p7)
}
  0x11   :  { %s232_s19 = smov 128   ;;  %s233_s20 = smov 8  }
  0x12   :  { %21 = dma.hbm_to_vmem [thread:$0]  %s292_s0, 256, %s16_s10, [#allocation3], %s232_s19, %s232_s19, %s233_s20  }
  0x13   :  { %s234_s23 = smov [#allocation5]   ;;  %s181_s27 = scalar_lea.hbm %s293_s1, 128 }
  0x14   :  { %s27_s24 = sshll.u32 %s234_s23, 4  ;;  %p182_p8 = scmp.ne.s32.totalorder %s293_s1, %s181_s27  ;;  %s28_s24 = int_to_ptr.vmem [resolvable:$true] %s27_s24 }
  0x15   :  { %p185_p9 = scmp.lt.u32.totalorder %s181_s27, %s293_s1 }
  0x17   :  { %p187_p10 = pnand %p185_p9, %p182_p8 }
  0x19   :  { %190 = shalt.err (!%p187_p10)
}
  0x1a   :  { %s191_s4 = scalar_lea.vmem %s28_s24, 128  ;;  %p196_p12 = scmp.lt.s32.totalorder %s28_s24, %s28_s24 }
  0x1b   :  { %p192_p11 = scmp.ne.s32.totalorder %s28_s24, %s191_s4  ;;  %p197_p13 = scmp.lt.s32.totalorder %s191_s4, %s191_s4 }
  0x1d   :  { %p198_p0 = por %p197_p13, %p196_p12 }
  0x1f   :  { %p199_p1 = pnand %p198_p0, %p192_p11 }
  0x21   :  { %202 = shalt.err (!%p199_p1)
}
  0x22   :  { %s235_s0 = smov 64   ;;  %s236_s5 = smov 4  }
  0x23   :  { %33 = dma.hbm_to_vmem [thread:$0]  %s293_s1, 128, %s28_s24, [#allocation6], %s235_s0, %s235_s0, %s236_s5  }
  0x24   :  { %225 = dma.done.wait [#allocation3], 256  }
  0x25   :  { %226 = vsyncadd [#allocation3], 4294967040 }
  0x26   :  { %227 = dma.done.wait [#allocation6], 128  }
  0x27   :  { %228 = vsyncadd [#allocation6], 4294967168  ;;  %v237_v0 = vmov 0.0   ;;  %vm238_vm0 = vmmov 0   ;;  %v155_v1 = vld [vmem:[#allocation2] ss:$8 sps:$4 sm:$0xff]  }
  0x28   :  { %137 = vmatprep.subr.bf16.mxu0 %v237_v0  ;;  %141 = vmatprep.mubr.msk.bf16.mxu0 %vm238_vm0, %v237_v0  ;;  %v157_v2 = vld [vmem:[#allocation2 + $0x4] ss:$8 sps:$4 sm:$0xff]   ;;  %s239_s8 = smov 127   ;;  %vm56_vm1 = vcmask 1039360   ;;  %v158_v6 = vld [vmem:[#allocation5] sm:$0xff]   ;;  %vm66_vm2 = vcmask 261120  }
  0x29   :  { %52 = vrot.lane.b32.xlu0 %v155_v1, %s239_s8  ;;  %138 = vmatpush3.bf16.msra.mxu0 %v155_v1  ;;  %s240_s1 = smov [#allocation7]  }
  0x2a   :  { %139 = vmatprep.subr.bf16.mxu0 %v237_v0  ;;  %s120_s9 = sshll.u32 %s240_s1, 4  ;;  %s121_s9 = int_to_ptr.vmem [resolvable:$true] %s120_s9 }
  0x2b   :  { %s203_s10 = scalar_lea.vmem %s121_s9, 128  ;;  %p208_p3 = scmp.lt.s32.totalorder %s121_s9, %s121_s9 }
  0x2c   :  { %p204_p2 = scmp.ne.s32.totalorder %s121_s9, %s203_s10  ;;  %p209_p4 = scmp.lt.s32.totalorder %s203_s10, %s203_s10 }
  0x2d   :  { %54 = vrot.lane.b32.xlu0 %v157_v2, %s239_s8 }
  0x2e   :  { %p210_p5 = por %p209_p4, %p208_p3 }
  0x30   :  { %p211_p6 = pnand %p210_p5, %p204_p2 }
  0x9b   :  { %v53_v3 = vpop.permute.xlu0 %52 }
  0x9f   :  { %v55_v4 = vpop.permute.xlu0 %54 }
  0xa0   :  { %v57_v5 = vsel %vm56_vm1, %v53_v3, %v55_v4 }
  0xa1   :  { %140 = vmatpush3.bf16.msra.mxu0 %v57_v5 }
  0xa4   :  { %142 = vmatmul.mubr.msk.bf16.vlgmr.msra.gmra.mrb[0].mxu0 %vm66_vm2, %v158_v6 }
 0x177   :  { %v104_v7 = vpop.f32.mrb[0].mxu0 }
 0x178   :  { %v143_v8 = vpop.f32.mrb[1].mxu0 }
 0x179   :  { %v107_v9 = vpop.f32.mrb[2].mxu0 }
 0x17a   :  { %v111_v10 = vmax.f32 %v104_v7, %v107_v9  ;;  %v144_v11 = vpop.f32.mrb[3].mxu0 }
 0x17c   :  { %v112_v12 = vmax.f32 %v111_v10, 0.0 }
 0x17e   :  { %113 = vst [vmem:[#allocation7] sm:$0xff] %v112_v12 }
 0x17f   :  { %214 = shalt.err (!%p211_p6)
}
 0x180   :  { %s215_s13 = scalar_lea.hbm %s294_s2, 128 }
 0x181   :  { %p216_p7 = scmp.ne.s32.totalorder %s294_s2, %s215_s13  ;;  %p219_p8 = scmp.lt.u32.totalorder %s215_s13, %s294_s2 }
 0x183   :  { %p221_p9 = pnand %p219_p8, %p216_p7 }
 0x185   :  { %224 = shalt.err (!%p221_p9)
}
 0x186   :  { %123 = dma.vmem_to_hbm [thread:$0]  %s121_s9, 128, %s294_s2, [#allocation4]  }
 0x187   :  { %229 = dma.done.wait [#allocation4], 128  }
 0x188   :  { %230 = vsyncadd [#allocation4], 4294967168 }
 0x189   :  { %127 = vsyncpa [#allocation3], 1 }
 0x18a   :  { %128 = vsyncpa [#allocation6], 1 }
 0x18b   :  { %129 = vsyncpa [#allocation4], 1 }

</bundles_post_ra>
